<compile_context>
chip_gen: v7x
topology: tpu7x:2x2x1
jax: 0.10.0
libtpu: 0.0.40
codegen_flags: <defaults>
</compile_context>

<pallas_src>
import jax
import jax.numpy as jnp
from jax.experimental import pallas as pl
from jax.experimental.pallas import tpu as pltpu


def _ce_row_loss_kernel(y_ref, labels_ref, out_ref):
    """Per-row loss: lse(y_i) - y[i, labels_i], 0 for rows with label < 0 (padding)."""
    y = y_ref[...].astype(jnp.float32)          # (TN, C)  upcast in-kernel (free VPU op)
    labels = labels_ref[...]                    # (TN, 1)  int32

    # Numerically stable logsumexp along the class (lane) axis.
    m = jnp.max(y, axis=1, keepdims=True)                                   # (TN, 1)
    lse = m + jnp.log(jnp.sum(jnp.exp(y - m), axis=1, keepdims=True))       # (TN, 1)

    # Gather y[i, labels[i]] with a select (no onehot cast, no log_p materialization).
    col = jax.lax.broadcasted_iota(jnp.int32, y.shape, 1)                   # (TN, C)
    picked = jnp.sum(jnp.where(col == labels, y, 0.0), axis=1, keepdims=True)  # (TN, 1)

    valid = labels >= 0                                                     # (TN, 1)
    out_ref[...] = jnp.where(valid, lse - picked, 0.0)                      # (TN, 1)


def _choose_row_tile(n, c, itemsize):
    """Pick TN (multiple of 8) so one y buffer is ~<=2 MiB (double-buffer safe on all gens)."""
    budget_bytes = 2 * 1024 * 1024
    tn = budget_bytes // max(1, c * itemsize)
    tn = max(8, min(1024, tn))
    tn = (tn // 8) * 8
    n_pad8 = ((n + 7) // 8) * 8
    return max(8, min(tn, n_pad8))


def cross_entropy_loss(y, labels, reduction="mean"):
    """Pallas equivalent of CrossEntropyLoss.forward(y, labels, reduction)."""
    if reduction not in ("mean", "sum", "none"):
        raise ValueError(f"unsupported reduction: {reduction}")

    N, C = y.shape
    tn = _choose_row_tile(N, C, jnp.dtype(y.dtype).itemsize)
    num_tiles = -(-N // tn)          # ceil
    n_pad = num_tiles * tn

    # Pad batch to a whole number of tiles; padded rows get label -1 -> loss 0.
    y_p = jnp.pad(y, ((0, n_pad - N), (0, 0))) if n_pad != N else y
    labels_i32 = labels.astype(jnp.int32)
    labels_p = (jnp.pad(labels_i32, (0, n_pad - N), constant_values=-1)
                if n_pad != N else labels_i32).reshape(n_pad, 1)

    row_losses = pl.pallas_call(
        _ce_row_loss_kernel,
        out_shape=jax.ShapeDtypeStruct((n_pad, 1), jnp.float32),
        grid=(num_tiles,),
        in_specs=[
            pl.BlockSpec((tn, C), lambda i: (i, 0)),   # logits tile (native dtype)
            pl.BlockSpec((tn, 1), lambda i: (i, 0)),   # labels tile
        ],
        out_specs=pl.BlockSpec((tn, 1), lambda i: (i, 0)),
        compiler_params=pltpu.CompilerParams(dimension_semantics=("parallel",)),
    )(y_p, labels_p)

    if reduction == "none":
        return row_losses[:N, 0]
    total = jnp.sum(row_losses)          # padded rows contribute exactly 0
    if reduction == "sum":
        return total
    return total * (1.0 / N)             # 'mean': multiply by precomputed reciprocal


if __name__ == "__main__":
    key = jax.random.PRNGKey(0)
    k_y, k_lab, k_y2, k_lab2 = jax.random.split(key, 4)

    # Small shapes consistent with the module: batch of 8 examples, 32 classes.
    N, C = 8, 32
    y = jax.random.normal(k_y, (N, C), dtype=jnp.float32)
    labels = jax.random.randint(k_lab, (N,), 0, C, dtype=jnp.int32)

    loss = cross_entropy_loss(y, labels, reduction="mean")
    jax.block_until_ready(loss)

    log_p = jax.nn.log_softmax(y, axis=1)
    ref_mean = -jnp.mean(log_p[jnp.arange(N), labels])
    assert jnp.allclose(loss, ref_mean, atol=1e-5, rtol=1e-5), (loss, ref_mean)

    loss_sum = cross_entropy_loss(y, labels, reduction="sum")
    ref_sum = -jnp.sum(log_p[jnp.arange(N), labels])
    assert jnp.allclose(loss_sum, ref_sum, atol=1e-4, rtol=1e-5), (loss_sum, ref_sum)

    loss_none = cross_entropy_loss(y, labels, reduction="none")
    ref_none = -log_p[jnp.arange(N), labels]
    assert jnp.allclose(loss_none, ref_none, atol=1e-5, rtol=1e-5)

    # Ragged batch (exercises tile padding + label masking) and non-128 class count.
    N2, C2 = 13, 40
    y2 = jax.random.normal(k_y2, (N2, C2), dtype=jnp.float32)
    labels2 = jax.random.randint(k_lab2, (N2,), 0, C2, dtype=jnp.int32)
    loss2 = cross_entropy_loss(y2, labels2, reduction="mean")
    log_p2 = jax.nn.log_softmax(y2, axis=1)
    ref2 = -jnp.mean(log_p2[jnp.arange(N2), labels2])
    assert jnp.allclose(loss2, ref2, atol=1e-5, rtol=1e-5), (loss2, ref2)

    # Native-dtype ingest (bf16 logits fed straight to the kernel, upcast on-chip).
    y_bf16 = y.astype(jnp.bfloat16)
    loss_bf16 = cross_entropy_loss(y_bf16, labels, reduction="mean")
    log_p_bf16 = jax.nn.log_softmax(y_bf16.astype(jnp.float32), axis=1)
    ref_bf16 = -jnp.mean(log_p_bf16[jnp.arange(N), labels])
    assert jnp.allclose(loss_bf16, ref_bf16, atol=1e-4, rtol=1e-4), (loss_bf16, ref_bf16)

    print("KERNEL_OK")
</pallas_src>

<mosaic_0001>
module attributes {stable_mosaic.version = 11 : i64} {
  func.func @_ce_row_loss_kernel(%arg0: i32, %arg1: memref<8x32xf32, #tpu.memory_space<vmem>>, %arg2: memref<8x1xi32, #tpu.memory_space<vmem>>, %arg3: memref<8x1xf32, #tpu.memory_space<vmem>>) attributes {dimension_semantics = [#tpu.dimension_semantics<parallel>], iteration_bounds = array<i64: 1>, scalar_prefetch = 0 : i64, scratch_operands = 0 : i64, tpu.core_type = #tpu.core_type<tc>, window_params = [{transform_indices = @transform_0, window_bounds = array<i64: 8, 32>}, {transform_indices = @transform_1, window_bounds = array<i64: 8, 1>}, {transform_indices = @transform_2, window_bounds = array<i64: 8, 1>}]} {
    %c0 = arith.constant 0 : index
    %c0_0 = arith.constant 0 : index
    %0 = vector.load %arg1[%c0, %c0_0] : memref<8x32xf32, #tpu.memory_space<vmem>>, vector<8x32xf32>
    %c0_1 = arith.constant 0 : index
    %c0_2 = arith.constant 0 : index
    %1 = vector.load %arg2[%c0_1, %c0_2] : memref<8x1xi32, #tpu.memory_space<vmem>>, vector<8x1xi32>
    %cst = arith.constant dense<0xFF800000> : vector<8xf32>
    %2 = vector.multi_reduction <maximumf>, %0, %cst [1] : vector<8x32xf32> to vector<8xf32>
    %3 = vector.shape_cast %2 : vector<8xf32> to vector<8x1xf32>
    %4 = vector.broadcast %3 : vector<8x1xf32> to vector<8x32xf32>
    %5 = arith.subf %0, %4 : vector<8x32xf32>
    %6 = math.exp %5 : vector<8x32xf32>
    %cst_3 = arith.constant dense<0.000000e+00> : vector<8xf32>
    %7 = vector.multi_reduction <add>, %6, %cst_3 [1] : vector<8x32xf32> to vector<8xf32>
    %8 = vector.shape_cast %7 : vector<8xf32> to vector<8x1xf32>
    %9 = math.log %8 : vector<8x1xf32>
    %10 = arith.addf %3, %9 : vector<8x1xf32>
    %11 = tpu.iota {dimensions = array<i32: 1>} : vector<8x32xi32>
    %12 = vector.broadcast %1 : vector<8x1xi32> to vector<8x32xi32>
    %13 = arith.cmpi eq, %11, %12 : vector<8x32xi32>
    %cst_4 = arith.constant 0.000000e+00 : f32
    %14 = vector.broadcast %cst_4 : f32 to vector<8x32xf32>
    %15 = arith.select %13, %0, %14 : vector<8x32xi1>, vector<8x32xf32>
    %cst_5 = arith.constant dense<0.000000e+00> : vector<8xf32>
    %16 = vector.multi_reduction <add>, %15, %cst_5 [1] : vector<8x32xf32> to vector<8xf32>
    %17 = vector.shape_cast %16 : vector<8xf32> to vector<8x1xf32>
    %c0_i32 = arith.constant 0 : i32
    %18 = vector.broadcast %c0_i32 : i32 to vector<8x1xi32>
    %19 = arith.cmpi sge, %1, %18 : vector<8x1xi32>
    %20 = arith.subf %10, %17 : vector<8x1xf32>
    %cst_6 = arith.constant 0.000000e+00 : f32
    %21 = vector.broadcast %cst_6 : f32 to vector<8x1xf32>
    %22 = arith.select %19, %20, %21 : vector<8x1xi1>, vector<8x1xf32>
    %c0_7 = arith.constant 0 : index
    %c0_8 = arith.constant 0 : index
    %23 = vector.load %arg3[%c0_7, %c0_8] : memref<8x1xf32, #tpu.memory_space<vmem>>, vector<8x1xf32>
    tpu.vector_store %arg3[%c0_7, %c0_8], %22 {strides = array<i32>} : memref<8x1xf32, #tpu.memory_space<vmem>>, vector<8x1xf32>,
    return
  }
  func.func @transform_0(%arg0: i32) -> (i32, i32) {
    %c0_i32 = arith.constant 0 : i32
    %c0_i32_0 = arith.constant 0 : i32
    return %arg0, %c0_i32 : i32, i32
  }
  func.func @transform_1(%arg0: i32) -> (i32, i32) {
    %c0_i32 = arith.constant 0 : i32
    %c0_i32_0 = arith.constant 0 : i32
    return %arg0, %c0_i32 : i32, i32
  }
  func.func @transform_2(%arg0: i32) -> (i32, i32) {
    %c0_i32 = arith.constant 0 : i32
    %c0_i32_0 = arith.constant 0 : i32
    return %arg0, %c0_i32 : i32, i32
  }
}

</mosaic_0001>

<bundles_post_ra>
// kernel: tpu_custom_call.1
= control target key start
LH: loop header
LB: loop body
LE: loop exit
PB: predicated region body
PF: predicated region fallthrough
CT: control target
= control target key end

     0   :  { %vm13_vm0 = vcmask 261120   ;;  %v51_v1 = vmov 0   ;;  %v26_v7 = vlaneseq  ;;  %vm39_vm3 = vcmask 7168   ;;  %s79_s0 = inlined_call_operand.vmem [shape: f32[8,32], index: 0, kind: input, shape index: {}]   ;;  %s80_s1 = inlined_call_operand.vmem [shape: s32[8,1], index: 1, kind: input, shape index: {}]   ;;  %s81_s2 = inlined_call_operand.vmem [shape: f32[8,1], index: 2, kind: output, shape index: {}]  }
   0x1   :  { %v11_v0 = vld [vmem:[%s79_s0] sm:$0xff]  ;;  %46 = vset.pattern.permute.xlu0 %v51_v1 }
   0x2   :  { %v14_v2 = vsel %vm13_vm0, %v11_v0, -inf  ;;  %v12_v3 = vld [vmem:[%s80_s1] sm:$0xff]  ;;  %v27_v8 = vand.u32 127, %v26_v7 }
   0x3   :  { %15 = vmax.xlane.f32.xlu0 %v14_v2  ;;  %vm36_vm2 = vcmp.ge.s32.totalorder %v12_v3, 0 }
  0x19   :  { %29 = vperm.xlu0 %46, %v12_v3  }
  0x90   :  { %v16_v4 = vpop.xlane.xlu0 %15 }
  0x91   :  { %v17_v5 = vsub.f32 %v11_v0, %v16_v4 }
  0x93   :  { %v18_v6 = vmul.f32 1.442695, %v17_v5 }
  0x95   :  { %47 = vpow2.f32 %v18_v6 }
  0x98   :  { %v30_v9 = vpop.permute.xlu0 %29 }
  0x99   :  { %vm31_vm1 = vcmp.eq.s32.totalorder %v27_v8, %v30_v9 }
  0x9a   :  { %v32_v11 = vsel %vm31_vm1, %v11_v0, 0.0 }
  0x9b   :  { %v33_v13 = vsel %vm13_vm0, %v32_v11, 0.0 }
  0x9f   :  { %v48_v10 = vpop.eup %47 }
  0xa0   :  { %v20_v12 = vsel %vm13_vm0, %v48_v10, 0.0 }
  0xa1   :  { %21 = vadd.xlane.f32.xlu1 %v20_v12 }
  0xa5   :  { %34 = vadd.xlane.f32.xlu1 %v33_v13 }
 0x12e   :  { %v22_v14 = vpop.xlane.xlu1 %21 }
 0x12f   :  { %49 = vlog2.f32 %v22_v14 }
 0x132   :  { %v35_v17 = vpop.xlane.xlu1 %34 }
 0x139   :  { %v50_v15 = vpop.eup %49 }
 0x13a   :  { %v24_v16 = vmul.f32 0.6931472, %v50_v15 }
 0x13c   :  { %v25_v18 = vadd.f32 %v24_v16, %v16_v4 }
 0x13e   :  { %v37_v19 = vsub.f32 %v25_v18, %v35_v17 }
 0x140   :  { %v38_v20 = vsel %vm36_vm2, %v37_v19, 0.0 }
 0x141   :  { %40 = vst.msk [vmem:[%s81_s2] sm:$0xff] %vm39_vm3, %v38_v20 }

</bundles_post_ra>
